<compile_context>
chip_gen: v5e
topology: v5e:2x2
jax: 0.10.0
libtpu: 0.0.40
codegen_flags: <defaults>
</compile_context>

<pallas_src>
import jax
import jax.numpy as jnp
from jax.experimental import pallas as pl
from jax.experimental.pallas import tpu as pltpu


def _round_up(v, m):
    return (v + m - 1) // m * m


def _vmem_capacity_bytes():
    """Per-core VMEM capacity; conservative fallback if the query is unavailable."""
    try:
        return int(pltpu.get_tpu_info().vmem_capacity_bytes)
    except Exception:  # hardware query unavailable (e.g. interpret mode)
        return 64 * 1024 * 1024


def _rnn_recurrence_kernel(p_ref, h0_ref, whh_ref, out_ref, h_scratch):
    """One grid step = T timesteps of the recurrence for one batch block.

    p_ref     : (T, TB, Hp)  p dtype      precomputed x_t @ W_ih^T + bias
    h0_ref    : (TB, Hp)     fp32         initial hidden for this batch block
    whh_ref   : (Hp, Hp)     weight dtype W_hh^T (zero-padded)
    out_ref   : (T, TB, Hp)  out dtype
    h_scratch : (TB, Hp)     fp32         hidden carried across time chunks
    """
    t_chunk = pl.program_id(1)

    @pl.when(t_chunk == 0)
    def _():
        h_scratch[...] = h0_ref[...]

    whh = whh_ref[...]            # hoisted out of the time loop
    n_steps = p_ref.shape[0]      # static chunk length

    def step(t, h):
        pre = p_ref[t].astype(jnp.float32) + jnp.dot(
            h.astype(whh.dtype), whh, preferred_element_type=jnp.float32)
        h_new = jnp.tanh(pre)                       # EUP slot, fp32
        out_ref[t] = h_new.astype(out_ref.dtype)    # lane-dense (TB, Hp) store
        return h_new

    # Partial unroll: keeps LLO scheduling visibility without blowing the
    # 64-vreg file when TB is wide.
    unroll = n_steps if n_steps <= 8 else 8
    h_scratch[...] = jax.lax.fori_loop(0, n_steps, step, h_scratch[...],
                                       unroll=unroll)


def abstract_rnn_forward(x, h0, w_ih, w_hh, b_ih, b_hh, *,
                         time_chunk=64, weight_dtype=jnp.bfloat16):
    """
    x    : (S, B, I)   time-major (batch_first=False)
    h0   : (1, B, H)
    w_ih : (H, I), w_hh : (H, H), b_ih/b_hh : (H,)   (PyTorch RNNCell layout)
    returns (output (S, B, H), next_hidden (1, B, H))
    """
    S, B, I = x.shape
    H = w_ih.shape[0]
    out_dtype = x.dtype
    p_dtype = weight_dtype            # stream the hoisted projection narrow too

    # ---- padded, lane/sublane-dense sizes ---------------------------------
    Hp = _round_up(H, 128)                                   # lane-dense hidden
    row_tile = 16 if out_dtype == jnp.bfloat16 else 8        # sublane packing
    Bp0 = _round_up(B, row_tile)

    # Batch rows per block: fill the MXU first (up to 128 rows); if the padded
    # batch reaches 256 this automatically yields >= 2 parallel blocks for the
    # second TensorCore (v7x megacore).
    TB = min(Bp0, 128)
    Bp = _round_up(Bp0, TB)

    # ---- time chunk, sized against the per-chip VMEM budget ---------------
    T = max(1, min(time_chunk, S))

    wbytes = jnp.dtype(weight_dtype).itemsize
    pbytes = jnp.dtype(p_dtype).itemsize
    obytes = jnp.dtype(out_dtype).itemsize

    cap = _vmem_capacity_bytes()
    budget = int(cap * 0.85)          # ~109 MiB on v5e/v6e, ~54 MiB on v7x

    def footprint(t):
        return (2 * Hp * Hp * wbytes            # W_hh^T (double-buffered)
                + 2 * t * TB * Hp * pbytes      # P stream (double-buffered)
                + 2 * t * TB * Hp * obytes      # out stream (double-buffered)
                + 2 * TB * Hp * 4               # h0 block
                + TB * Hp * 4)                  # fp32 h scratch

    while T > 1 and footprint(T) > budget:
        T //= 2
    Sp = _round_up(S, T)

    vmem_limit = min(max(int(footprint(T) * 1.5) + (1 << 20), 16 << 20), budget)

    # ---- hoisted input projection, produced directly in padded layout -----
    wih_t_pad = jnp.pad(jnp.transpose(w_ih).astype(weight_dtype),
                        ((0, 0), (0, Hp - H)))                       # (I, Hp)
    bias_pad = jnp.pad((b_ih + b_hh).astype(jnp.float32), (0, Hp - H))

    x_pad = jnp.pad(x, ((0, Sp - S), (0, Bp - B), (0, 0)))
    p_pad = (jnp.einsum("sbi,ih->sbh", x_pad.astype(weight_dtype), wih_t_pad,
                        preferred_element_type=jnp.float32)
             + bias_pad).astype(p_dtype)                             # (Sp,Bp,Hp)

    h0_pad = jnp.pad(h0.reshape(B, H).astype(jnp.float32),
                     ((0, Bp - B), (0, Hp - H)))
    whh_t_pad = jnp.pad(jnp.transpose(w_hh).astype(weight_dtype),
                        ((0, Hp - H), (0, Hp - H)))

    grid_spec = pltpu.PrefetchScalarGridSpec(
        num_scalar_prefetch=0,
        grid=(Bp // TB, Sp // T),
        in_specs=[
            pl.BlockSpec((T, TB, Hp), lambda b, c: (c, b, 0)),   # P chunk
            pl.BlockSpec((TB, Hp),    lambda b, c: (b, 0)),      # h0 block
            pl.BlockSpec((Hp, Hp),    lambda b, c: (0, 0)),      # W_hh^T
        ],
        out_specs=pl.BlockSpec((T, TB, Hp), lambda b, c: (c, b, 0)),
        scratch_shapes=[pltpu.VMEM((TB, Hp), jnp.float32)],
    )

    out_pad = pl.pallas_call(
        _rnn_recurrence_kernel,
        out_shape=jax.ShapeDtypeStruct((Sp, Bp, Hp), out_dtype),
        grid_spec=grid_spec,
        compiler_params=pltpu.CompilerParams(
            dimension_semantics=("parallel", "arbitrary"),
            vmem_limit_bytes=vmem_limit,
        ),
    )(p_pad, h0_pad, whh_t_pad)

    out = out_pad[:S, :B, :H]
    h_n = out[S - 1][None]           # final hidden state == last output row
    return out, h_n


def _reference(x, h0, w_ih, w_hh, b_ih, b_hh):
    """Pure-JAX fp32 reference for validation."""
    def step(h, x_t):
        h_new = jnp.tanh(x_t @ w_ih.T + b_ih + h @ w_hh.T + b_hh)
        return h_new, h_new
    h_last, outs = jax.lax.scan(step, h0[0], x)
    return outs, h_last[None]


if __name__ == "__main__":
    S, B, I, H = 8, 2, 4, 32   # seq=8, batch=2, input=4, hidden=32

    key = jax.random.PRNGKey(0)
    k1, k2, k3, k4, k5, k6 = jax.random.split(key, 6)

    x    = jax.random.normal(k1, (S, B, I), dtype=jnp.float32)
    h0   = jax.random.normal(k2, (1, B, H), dtype=jnp.float32)
    w_ih = jax.random.normal(k3, (H, I), dtype=jnp.float32) * 0.1
    w_hh = jax.random.normal(k4, (H, H), dtype=jnp.float32) * 0.1
    b_ih = jax.random.normal(k5, (H,),   dtype=jnp.float32) * 0.1
    b_hh = jax.random.normal(k6, (H,),   dtype=jnp.float32) * 0.1

    out_ref, h_ref = _reference(x, h0, w_ih, w_hh, b_ih, b_hh)

    # Default (bf16 weight / projection stream, fp32 accumulation).
    out_bf, h_bf = abstract_rnn_forward(x, h0, w_ih, w_hh, b_ih, b_hh)
    out_bf = jax.block_until_ready(out_bf)
    h_bf = jax.block_until_ready(h_bf)
    assert out_bf.shape == (S, B, H) and h_bf.shape == (1, B, H)
    assert jnp.allclose(out_bf, out_ref, atol=2e-2, rtol=2e-2)
    assert jnp.allclose(h_bf, h_ref, atol=2e-2, rtol=2e-2)

    # fp32 weights for tight numerical parity with the reference.
    out_f32, h_f32 = abstract_rnn_forward(x, h0, w_ih, w_hh, b_ih, b_hh,
                                          weight_dtype=jnp.float32)
    out_f32 = jax.block_until_ready(out_f32)
    h_f32 = jax.block_until_ready(h_f32)
    assert jnp.allclose(out_f32, out_ref, atol=1e-5, rtol=1e-5)
    assert jnp.allclose(h_f32, h_ref, atol=1e-5, rtol=1e-5)

    print("KERNEL_OK")
</pallas_src>

<mosaic_0001>
module attributes {stable_mosaic.version = 11 : i64} {
  func.func @_rnn_recurrence_kernel(%arg0: i32, %arg1: i32, %arg2: memref<8x8x128xbf16, #tpu.memory_space<vmem>>, %arg3: memref<8x128xf32, #tpu.memory_space<vmem>>, %arg4: memref<128x128xbf16, #tpu.memory_space<vmem>>, %arg5: memref<8x8x128xf32, #tpu.memory_space<vmem>>, %arg6: memref<8x128xf32, #tpu.memory_space<vmem>>) attributes {dimension_semantics = [#tpu.dimension_semantics<parallel>, #tpu.dimension_semantics<arbitrary>], iteration_bounds = array<i64: 1, 1>, scalar_prefetch = 0 : i64, scratch_operands = 1 : i64, tpu.core_type = #tpu.core_type<tc>, window_params = [{transform_indices = @transform_0, window_bounds = array<i64: 8, 8, 128>}, {transform_indices = @transform_1, window_bounds = array<i64: 8, 128>}, {pipeline_mode = #tpu.pipeline_mode<synchronous>, transform_indices = @transform_2, window_bounds = array<i64: 128, 128>}, {transform_indices = @transform_3, window_bounds = array<i64: 8, 8, 128>}]} {
    %c0_i32 = arith.constant 0 : i32
    %0 = arith.cmpi eq, %arg1, %c0_i32 : i32
    %1 = arith.extui %0 : i1 to i32
    %c0_i32_0 = arith.constant 0 : i32
    %2 = arith.cmpi ne, %1, %c0_i32_0 : i32
    scf.if %2 {
      %c0_46 = arith.constant 0 : index
      %c0_47 = arith.constant 0 : index
      %102 = vector.load %arg3[%c0_46, %c0_47] : memref<8x128xf32, #tpu.memory_space<vmem>>, vector<8x128xf32>
      %c0_48 = arith.constant 0 : index
      %c0_49 = arith.constant 0 : index
      %103 = vector.load %arg6[%c0_48, %c0_49] : memref<8x128xf32, #tpu.memory_space<vmem>>, vector<8x128xf32>
      tpu.vector_store %arg6[%c0_48, %c0_49], %102 {strides = array<i32>} : memref<8x128xf32, #tpu.memory_space<vmem>>, vector<8x128xf32>,
    } else {
    }
    %c0 = arith.constant 0 : index
    %c0_1 = arith.constant 0 : index
    %3 = vector.load %arg4[%c0, %c0_1] : memref<128x128xbf16, #tpu.memory_space<vmem>>, vector<128x128xbf16>
    %c0_2 = arith.constant 0 : index
    %c0_3 = arith.constant 0 : index
    %4 = vector.load %arg6[%c0_2, %c0_3] : memref<8x128xf32, #tpu.memory_space<vmem>>, vector<8x128xf32>
    %c0_i32_4 = arith.constant 0 : i32
    %5 = arith.index_cast %c0_i32_4 : i32 to index
    %c0_5 = arith.constant 0 : index
    %c0_6 = arith.constant 0 : index
    %6 = vector.load %arg2[%5, %c0_5, %c0_6] : memref<8x8x128xbf16, #tpu.memory_space<vmem>>, vector<1x8x128xbf16>
    %7 = vector.shape_cast %6 : vector<1x8x128xbf16> to vector<8x128xbf16>
    %8 = arith.extf %7 : vector<8x128xbf16> to vector<8x128xf32>
    %9 = arith.truncf %4 : vector<8x128xf32> to vector<8x128xbf16>
    %cst = arith.constant dense<0.000000e+00> : vector<8x128xf32>
    %10 = tpu.matmul %9, %3, %cst {dimension_numbers = #tpu.dot_dimension_numbers<[1], [0], [0], [1], [0, 0, 1, 1], [], []>} : vector<8x128xbf16>, vector<128x128xbf16>, vector<8x128xf32> -> vector<8x128xf32>
    %11 = arith.addf %8, %10 : vector<8x128xf32>
    %12 = math.tanh %11 : vector<8x128xf32>
    %13 = arith.index_cast %c0_i32_4 : i32 to index
    %c0_7 = arith.constant 0 : index
    %c0_8 = arith.constant 0 : index
    %14 = vector.load %arg5[%13, %c0_7, %c0_8] : memref<8x8x128xf32, #tpu.memory_space<vmem>>, vector<1x8x128xf32>
    %15 = vector.shape_cast %14 : vector<1x8x128xf32> to vector<8x128xf32>
    %16 = vector.shape_cast %12 : vector<8x128xf32> to vector<1x8x128xf32>
    tpu.vector_store %arg5[%13, %c0_7, %c0_8], %16 {strides = array<i32>} : memref<8x8x128xf32, #tpu.memory_space<vmem>>, vector<1x8x128xf32>,
    %c1_i32 = arith.constant 1 : i32
    %17 = arith.index_cast %c1_i32 : i32 to index
    %c0_9 = arith.constant 0 : index
    %c0_10 = arith.constant 0 : index
    %18 = vector.load %arg2[%17, %c0_9, %c0_10] : memref<8x8x128xbf16, #tpu.memory_space<vmem>>, vector<1x8x128xbf16>
    %19 = vector.shape_cast %18 : vector<1x8x128xbf16> to vector<8x128xbf16>
    %20 = arith.extf %19 : vector<8x128xbf16> to vector<8x128xf32>
    %21 = arith.truncf %12 : vector<8x128xf32> to vector<8x128xbf16>
    %cst_11 = arith.constant dense<0.000000e+00> : vector<8x128xf32>
    %22 = tpu.matmul %21, %3, %cst_11 {dimension_numbers = #tpu.dot_dimension_numbers<[1], [0], [0], [1], [0, 0, 1, 1], [], []>} : vector<8x128xbf16>, vector<128x128xbf16>, vector<8x128xf32> -> vector<8x128xf32>
    %23 = arith.addf %20, %22 : vector<8x128xf32>
    %24 = math.tanh %23 : vector<8x128xf32>
    %25 = arith.index_cast %c1_i32 : i32 to index
    %c0_12 = arith.constant 0 : index
    %c0_13 = arith.constant 0 : index
    %26 = vector.load %arg5[%25, %c0_12, %c0_13] : memref<8x8x128xf32, #tpu.memory_space<vmem>>, vector<1x8x128xf32>
    %27 = vector.shape_cast %26 : vector<1x8x128xf32> to vector<8x128xf32>
    %28 = vector.shape_cast %24 : vector<8x128xf32> to vector<1x8x128xf32>
    tpu.vector_store %arg5[%25, %c0_12, %c0_13], %28 {strides = array<i32>} : memref<8x8x128xf32, #tpu.memory_space<vmem>>, vector<1x8x128xf32>,
    %c2_i32 = arith.constant 2 : i32
    %29 = arith.index_cast %c2_i32 : i32 to index
    %c0_14 = arith.constant 0 : index
    %c0_15 = arith.constant 0 : index
    %30 = vector.load %arg2[%29, %c0_14, %c0_15] : memref<8x8x128xbf16, #tpu.memory_space<vmem>>, vector<1x8x128xbf16>
    %31 = vector.shape_cast %30 : vector<1x8x128xbf16> to vector<8x128xbf16>
    %32 = arith.extf %31 : vector<8x128xbf16> to vector<8x128xf32>
    %33 = arith.truncf %24 : vector<8x128xf32> to vector<8x128xbf16>
    %cst_16 = arith.constant dense<0.000000e+00> : vector<8x128xf32>
    %34 = tpu.matmul %33, %3, %cst_16 {dimension_numbers = #tpu.dot_dimension_numbers<[1], [0], [0], [1], [0, 0, 1, 1], [], []>} : vector<8x128xbf16>, vector<128x128xbf16>, vector<8x128xf32> -> vector<8x128xf32>
    %35 = arith.addf %32, %34 : vector<8x128xf32>
    %36 = math.tanh %35 : vector<8x128xf32>
    %37 = arith.index_cast %c2_i32 : i32 to index
    %c0_17 = arith.constant 0 : index
    %c0_18 = arith.constant 0 : index
    %38 = vector.load %arg5[%37, %c0_17, %c0_18] : memref<8x8x128xf32, #tpu.memory_space<vmem>>, vector<1x8x128xf32>
    %39 = vector.shape_cast %38 : vector<1x8x128xf32> to vector<8x128xf32>
    %40 = vector.shape_cast %36 : vector<8x128xf32> to vector<1x8x128xf32>
    tpu.vector_store %arg5[%37, %c0_17, %c0_18], %40 {strides = array<i32>} : memref<8x8x128xf32, #tpu.memory_space<vmem>>, vector<1x8x128xf32>,
    %c3_i32 = arith.constant 3 : i32
    %41 = arith.index_cast %c3_i32 : i32 to index
    %c0_19 = arith.constant 0 : index
    %c0_20 = arith.constant 0 : index
    %42 = vector.load %arg2[%41, %c0_19, %c0_20] : memref<8x8x128xbf16, #tpu.memory_space<vmem>>, vector<1x8x128xbf16>
    %43 = vector.shape_cast %42 : vector<1x8x128xbf16> to vector<8x128xbf16>
    %44 = arith.extf %43 : vector<8x128xbf16> to vector<8x128xf32>
    %45 = arith.truncf %36 : vector<8x128xf32> to vector<8x128xbf16>
    %cst_21 = arith.constant dense<0.000000e+00> : vector<8x128xf32>
    %46 = tpu.matmul %45, %3, %cst_21 {dimension_numbers = #tpu.dot_dimension_numbers<[1], [0], [0], [1], [0, 0, 1, 1], [], []>} : vector<8x128xbf16>, vector<128x128xbf16>, vector<8x128xf32> -> vector<8x128xf32>
    %47 = arith.addf %44, %46 : vector<8x128xf32>
    %48 = math.tanh %47 : vector<8x128xf32>
    %49 = arith.index_cast %c3_i32 : i32 to index
    %c0_22 = arith.constant 0 : index
    %c0_23 = arith.constant 0 : index
    %50 = vector.load %arg5[%49, %c0_22, %c0_23] : memref<8x8x128xf32, #tpu.memory_space<vmem>>, vector<1x8x128xf32>
    %51 = vector.shape_cast %50 : vector<1x8x128xf32> to vector<8x128xf32>
    %52 = vector.shape_cast %48 : vector<8x128xf32> to vector<1x8x128xf32>
    tpu.vector_store %arg5[%49, %c0_22, %c0_23], %52 {strides = array<i32>} : memref<8x8x128xf32, #tpu.memory_space<vmem>>, vector<1x8x128xf32>,
    %c4_i32 = arith.constant 4 : i32
    %53 = arith.index_cast %c4_i32 : i32 to index
    %c0_24 = arith.constant 0 : index
    %c0_25 = arith.constant 0 : index
    %54 = vector.load %arg2[%53, %c0_24, %c0_25] : memref<8x8x128xbf16, #tpu.memory_space<vmem>>, vector<1x8x128xbf16>
    %55 = vector.shape_cast %54 : vector<1x8x128xbf16> to vector<8x128xbf16>
    %56 = arith.extf %55 : vector<8x128xbf16> to vector<8x128xf32>
    %57 = arith.truncf %48 : vector<8x128xf32> to vector<8x128xbf16>
    %cst_26 = arith.constant dense<0.000000e+00> : vector<8x128xf32>
    %58 = tpu.matmul %57, %3, %cst_26 {dimension_numbers = #tpu.dot_dimension_numbers<[1], [0], [0], [1], [0, 0, 1, 1], [], []>} : vector<8x128xbf16>, vector<128x128xbf16>, vector<8x128xf32> -> vector<8x128xf32>
    %59 = arith.addf %56, %58 : vector<8x128xf32>
    %60 = math.tanh %59 : vector<8x128xf32>
    %61 = arith.index_cast %c4_i32 : i32 to index
    %c0_27 = arith.constant 0 : index
    %c0_28 = arith.constant 0 : index
    %62 = vector.load %arg5[%61, %c0_27, %c0_28] : memref<8x8x128xf32, #tpu.memory_space<vmem>>, vector<1x8x128xf32>
    %63 = vector.shape_cast %62 : vector<1x8x128xf32> to vector<8x128xf32>
    %64 = vector.shape_cast %60 : vector<8x128xf32> to vector<1x8x128xf32>
    tpu.vector_store %arg5[%61, %c0_27, %c0_28], %64 {strides = array<i32>} : memref<8x8x128xf32, #tpu.memory_space<vmem>>, vector<1x8x128xf32>,
    %c5_i32 = arith.constant 5 : i32
    %65 = arith.index_cast %c5_i32 : i32 to index
    %c0_29 = arith.constant 0 : index
    %c0_30 = arith.constant 0 : index
    %66 = vector.load %arg2[%65, %c0_29, %c0_30] : memref<8x8x128xbf16, #tpu.memory_space<vmem>>, vector<1x8x128xbf16>
    %67 = vector.shape_cast %66 : vector<1x8x128xbf16> to vector<8x128xbf16>
    %68 = arith.extf %67 : vector<8x128xbf16> to vector<8x128xf32>
    %69 = arith.truncf %60 : vector<8x128xf32> to vector<8x128xbf16>
    %cst_31 = arith.constant dense<0.000000e+00> : vector<8x128xf32>
    %70 = tpu.matmul %69, %3, %cst_31 {dimension_numbers = #tpu.dot_dimension_numbers<[1], [0], [0], [1], [0, 0, 1, 1], [], []>} : vector<8x128xbf16>, vector<128x128xbf16>, vector<8x128xf32> -> vector<8x128xf32>
    %71 = arith.addf %68, %70 : vector<8x128xf32>
    %72 = math.tanh %71 : vector<8x128xf32>
    %73 = arith.index_cast %c5_i32 : i32 to index
    %c0_32 = arith.constant 0 : index
    %c0_33 = arith.constant 0 : index
    %74 = vector.load %arg5[%73, %c0_32, %c0_33] : memref<8x8x128xf32, #tpu.memory_space<vmem>>, vector<1x8x128xf32>
    %75 = vector.shape_cast %74 : vector<1x8x128xf32> to vector<8x128xf32>
    %76 = vector.shape_cast %72 : vector<8x128xf32> to vector<1x8x128xf32>
    tpu.vector_store %arg5[%73, %c0_32, %c0_33], %76 {strides = array<i32>} : memref<8x8x128xf32, #tpu.memory_space<vmem>>, vector<1x8x128xf32>,
    %c6_i32 = arith.constant 6 : i32
    %77 = arith.index_cast %c6_i32 : i32 to index
    %c0_34 = arith.constant 0 : index
    %c0_35 = arith.constant 0 : index
    %78 = vector.load %arg2[%77, %c0_34, %c0_35] : memref<8x8x128xbf16, #tpu.memory_space<vmem>>, vector<1x8x128xbf16>
    %79 = vector.shape_cast %78 : vector<1x8x128xbf16> to vector<8x128xbf16>
    %80 = arith.extf %79 : vector<8x128xbf16> to vector<8x128xf32>
    %81 = arith.truncf %72 : vector<8x128xf32> to vector<8x128xbf16>
    %cst_36 = arith.constant dense<0.000000e+00> : vector<8x128xf32>
    %82 = tpu.matmul %81, %3, %cst_36 {dimension_numbers = #tpu.dot_dimension_numbers<[1], [0], [0], [1], [0, 0, 1, 1], [], []>} : vector<8x128xbf16>, vector<128x128xbf16>, vector<8x128xf32> -> vector<8x128xf32>
    %83 = arith.addf %80, %82 : vector<8x128xf32>
    %84 = math.tanh %83 : vector<8x128xf32>
    %85 = arith.index_cast %c6_i32 : i32 to index
    %c0_37 = arith.constant 0 : index
    %c0_38 = arith.constant 0 : index
    %86 = vector.load %arg5[%85, %c0_37, %c0_38] : memref<8x8x128xf32, #tpu.memory_space<vmem>>, vector<1x8x128xf32>
    %87 = vector.shape_cast %86 : vector<1x8x128xf32> to vector<8x128xf32>
    %88 = vector.shape_cast %84 : vector<8x128xf32> to vector<1x8x128xf32>
    tpu.vector_store %arg5[%85, %c0_37, %c0_38], %88 {strides = array<i32>} : memref<8x8x128xf32, #tpu.memory_space<vmem>>, vector<1x8x128xf32>,
    %c7_i32 = arith.constant 7 : i32
    %89 = arith.index_cast %c7_i32 : i32 to index
    %c0_39 = arith.constant 0 : index
    %c0_40 = arith.constant 0 : index
    %90 = vector.load %arg2[%89, %c0_39, %c0_40] : memref<8x8x128xbf16, #tpu.memory_space<vmem>>, vector<1x8x128xbf16>
    %91 = vector.shape_cast %90 : vector<1x8x128xbf16> to vector<8x128xbf16>
    %92 = arith.extf %91 : vector<8x128xbf16> to vector<8x128xf32>
    %93 = arith.truncf %84 : vector<8x128xf32> to vector<8x128xbf16>
    %cst_41 = arith.constant dense<0.000000e+00> : vector<8x128xf32>
    %94 = tpu.matmul %93, %3, %cst_41 {dimension_numbers = #tpu.dot_dimension_numbers<[1], [0], [0], [1], [0, 0, 1, 1], [], []>} : vector<8x128xbf16>, vector<128x128xbf16>, vector<8x128xf32> -> vector<8x128xf32>
    %95 = arith.addf %92, %94 : vector<8x128xf32>
    %96 = math.tanh %95 : vector<8x128xf32>
    %97 = arith.index_cast %c7_i32 : i32 to index
    %c0_42 = arith.constant 0 : index
    %c0_43 = arith.constant 0 : index
    %98 = vector.load %arg5[%97, %c0_42, %c0_43] : memref<8x8x128xf32, #tpu.memory_space<vmem>>, vector<1x8x128xf32>
    %99 = vector.shape_cast %98 : vector<1x8x128xf32> to vector<8x128xf32>
    %100 = vector.shape_cast %96 : vector<8x128xf32> to vector<1x8x128xf32>
    tpu.vector_store %arg5[%97, %c0_42, %c0_43], %100 {strides = array<i32>} : memref<8x8x128xf32, #tpu.memory_space<vmem>>, vector<1x8x128xf32>,
    %c8_i32 = arith.constant 8 : i32
    %c0_44 = arith.constant 0 : index
    %c0_45 = arith.constant 0 : index
    %101 = vector.load %arg6[%c0_44, %c0_45] : memref<8x128xf32, #tpu.memory_space<vmem>>, vector<8x128xf32>
    tpu.vector_store %arg6[%c0_44, %c0_45], %96 {strides = array<i32>} : memref<8x128xf32, #tpu.memory_space<vmem>>, vector<8x128xf32>,
    return
  }
  func.func @transform_0(%arg0: i32, %arg1: i32) -> (i32, i32, i32) {
    %c0_i32 = arith.constant 0 : i32
    %c0_i32_0 = arith.constant 0 : i32
    return %arg1, %arg0, %c0_i32 : i32, i32, i32
  }
  func.func @transform_1(%arg0: i32, %arg1: i32) -> (i32, i32) {
    %c0_i32 = arith.constant 0 : i32
    %c0_i32_0 = arith.constant 0 : i32
    return %arg0, %c0_i32 : i32, i32
  }
  func.func @transform_2(%arg0: i32, %arg1: i32) -> (i32, i32) {
    %c0_i32 = arith.constant 0 : i32
    %c0_i32_0 = arith.constant 0 : i32
    %c0_i32_1 = arith.constant 0 : i32
    return %c0_i32, %c0_i32_0 : i32, i32
  }
  func.func @transform_3(%arg0: i32, %arg1: i32) -> (i32, i32, i32) {
    %c0_i32 = arith.constant 0 : i32
    %c0_i32_0 = arith.constant 0 : i32
    return %arg1, %arg0, %c0_i32 : i32, i32, i32
  }
}

</mosaic_0001>

<bundles_post_ra>
// kernel: tpu_custom_call.1
= control target key start
LH: loop header
LB: loop body
LE: loop exit
PB: predicated region body
PF: predicated region fallthrough
CT: control target
= control target key end

     0   :  { %8 = vsyncpa [#allocation4], 0  ;;  %s524_s0 = inlined_call_operand.hbm [shape: bf16[8,8,128], index: 0, kind: input, shape index: {}]   ;;  %s525_s1 = inlined_call_operand.hbm [shape: f32[8,128], index: 1, kind: input, shape index: {}]   ;;  %s526_s2 = inlined_call_operand.hbm [shape: bf16[128,128], index: 2, kind: input, shape index: {}]   ;;  %s527_s3 = inlined_call_operand.hbm [shape: f32[8,8,128], index: 3, kind: output, shape index: {}]  }
   0x1   :  { %9 = vsyncpa [#allocation7], 0  ;;  %s29_s14 = sshll.u32 %s525_s1, 4  ;;  %s30_s14 = int_to_ptr.hbm [resolvable:$true] %s29_s14 }
   0x2   :  { %10 = vsyncpa [#allocation5], 0  ;;  %s484_s15 = smov [#allocation6]   ;;  %s15_s19 = sshll.u32 %s524_s0, 4  ;;  %s16_s19 = int_to_ptr.hbm [resolvable:$true] %s15_s19 }
   0x3   :  { %s31_s16 = sshll.u32 %s484_s15, 4  ;;  %s485_s20 = smov [#allocation3]   ;;  %s32_s16 = int_to_ptr.vmem [resolvable:$true] %s31_s16 }
   0x4   :  { %34 = dma.hbm_to_vmem [thread:$0]  %s30_s14, 128, %s32_s16, [#allocation7]  }
   0x5   :  { %s17_s21 = sshll.u32 %s485_s20, 4  ;;  %s486_s22 = smov 64   ;;  %s18_s21 = int_to_ptr.vmem [resolvable:$true] %s17_s21 }
   0x6   :  { %s487_s23 = smov 4   ;;  %s39_s1 = sshll.u32 %s526_s2, 4  ;;  %s40_s1 = int_to_ptr.hbm [resolvable:$true] %s39_s1 }
   0x7   :  { %23 = dma.hbm_to_vmem [thread:$0]  %s16_s19, 512, %s18_s21, [#allocation4], %s486_s22, %s486_s22, %s487_s23  }
   0x8   :  { %s488_s26 = smov [#allocation8]  }
   0x9   :  { %s41_s27 = sshll.u32 %s488_s26, 4  ;;  %s42_s27 = int_to_ptr.vmem [resolvable:$true] %s41_s27 }
   0xa   :  { %47 = dma.hbm_to_vmem [thread:$0]  %s40_s1, 1024, %s42_s27, [#allocation7], %s486_s22, %s486_s22, %s487_s23  }
   0xb   :  { %478 = dma.done.wait [#allocation4], 512  }
   0xc   :  { %479 = vsyncadd [#allocation4], 4294966784 }
   0xd   :  { %480 = dma.done.wait [#allocation7], 1152  }
   0xe   :  { %481 = vsyncadd [#allocation7], 4294966144  ;;  %v357_v0 = vld [vmem:[#allocation8 + $0x38] sm:$0xff]  ;;  %v356_v1 = vld [vmem:[#allocation8 + $0x30] sm:$0xff]  ;;  %s489_s0 = smov [#allocation9]   ;;  %s304_s30 = sshll.u32 %s527_s3, 4  ;;  %s305_s30 = int_to_ptr.hbm [resolvable:$true] %s304_s30 }
   0xf   :  { %134 = vmatpush.bf16.msra.mxu0 %v357_v0  ;;  %154 = vmatpush.bf16.msra.mxu1 %v357_v0  ;;  %v355_v2 = vld [vmem:[#allocation8 + $0x28] sm:$0xff]  ;;  %v354_v3 = vld [vmem:[#allocation8 + $0x20] sm:$0xff]  ;;  %v353_v4 = vld [vmem:[#allocation8 + $0x18] sm:$0xff]  ;;  %s302_s2 = sshll.u32 %s489_s0, 4  ;;  %s490_s4 = smov 128   ;;  %s303_s2 = int_to_ptr.vmem [resolvable:$true] %s302_s2 }
  0x10   :  { %175 = vmatpush.bf16.msra.mxu2 %v357_v0  ;;  %196 = vmatpush.bf16.msra.mxu3 %v357_v0  ;;  %v352_v5 = vld [vmem:[#allocation8 + $0x10] sm:$0xff]  ;;  %v351_v6 = vld [vmem:[#allocation8 + $0x8] sm:$0xff]  ;;  %v350_v7 = vld [vmem:[#allocation8] sm:$0xff]  ;;  %s491_s5 = smov 8  }
  0x11   :  { %v64_v8 = vld [vmem:[#allocation6] sm:$0xff]  ;;  %v172_v23 = vld [vmem:[#allocation3 + $0x8] sm:$0xff]   ;;  %v214_v36 = vld [vmem:[#allocation3 + $0x10] sm:$0xff]  }
  0x12   :  { %v85_v9 = vpack.c.bf16 %v64_v8, %v64_v8  ;;  %v83_v10 = vld [vmem:[#allocation3] sm:$0xff]   ;;  %v173_v24 = vunpack.c.l.bf16 %v172_v23  ;;  %v194_v30 = vunpack.c.h.bf16 %v172_v23  ;;  %v215_v37 = vunpack.c.l.bf16 %v214_v36  ;;  %v256_v49 = vld [vmem:[#allocation3 + $0x18] sm:$0xff]  }
  0x13   :  { %135 = vmatpush.bf16.msra.mxu0 %v356_v1  ;;  %155 = vmatpush.bf16.msra.mxu1 %v356_v1  ;;  %v84_v11 = vunpack.c.l.bf16 %v83_v10  ;;  %v152_v17 = vunpack.c.h.bf16 %v83_v10  ;;  %v236_v43 = vunpack.c.h.bf16 %v214_v36  ;;  %v257_v50 = vunpack.c.l.bf16 %v256_v49 }
  0x14   :  { %176 = vmatpush.bf16.msra.mxu2 %v356_v1  ;;  %197 = vmatpush.bf16.msra.mxu3 %v356_v1  ;;  %v278_v56 = vunpack.c.h.bf16 %v256_v49 }
  0x17   :  { %136 = vmatpush.bf16.msra.mxu0 %v355_v2  ;;  %156 = vmatpush.bf16.msra.mxu1 %v355_v2 }
  0x18   :  { %177 = vmatpush.bf16.msra.mxu2 %v355_v2  ;;  %198 = vmatpush.bf16.msra.mxu3 %v355_v2 }
  0x1b   :  { %137 = vmatpush.bf16.msra.mxu0 %v354_v3  ;;  %157 = vmatpush.bf16.msra.mxu1 %v354_v3 }
  0x1c   :  { %178 = vmatpush.bf16.msra.mxu2 %v354_v3  ;;  %199 = vmatpush.bf16.msra.mxu3 %v354_v3 }
  0x1f   :  { %138 = vmatpush.bf16.msra.mxu0 %v353_v4  ;;  %158 = vmatpush.bf16.msra.mxu1 %v353_v4 }
  0x20   :  { %179 = vmatpush.bf16.msra.mxu2 %v353_v4  ;;  %200 = vmatpush.bf16.msra.mxu3 %v353_v4 }
  0x23   :  { %139 = vmatpush.bf16.msra.mxu0 %v352_v5  ;;  %159 = vmatpush.bf16.msra.mxu1 %v352_v5 }
  0x24   :  { %180 = vmatpush.bf16.msra.mxu2 %v352_v5  ;;  %201 = vmatpush.bf16.msra.mxu3 %v352_v5 }
  0x27   :  { %140 = vmatpush.bf16.msra.mxu0 %v351_v6  ;;  %160 = vmatpush.bf16.msra.mxu1 %v351_v6 }
  0x28   :  { %181 = vmatpush.bf16.msra.mxu2 %v351_v6  ;;  %202 = vmatpush.bf16.msra.mxu3 %v351_v6 }
  0x2b   :  { %141 = vmatpush.bf16.msra.mxu0 %v350_v7  ;;  %161 = vmatpush.bf16.msra.mxu1 %v350_v7 }
  0x2c   :  { %182 = vmatpush.bf16.msra.mxu2 %v350_v7  ;;  %203 = vmatpush.bf16.msra.mxu3 %v350_v7 }
  0x2e   :  { %142 = vmatmul.bf16.vlgmr.msra.gmra.mxu0 %v85_v9 }
  0x2f   :  { %217 = vmatpush.bf16.msrb.mxu0 %v357_v0  ;;  %238 = vmatpush.bf16.msrb.mxu1 %v357_v0 }
  0x30   :  { %259 = vmatpush.bf16.msrb.mxu2 %v357_v0  ;;  %280 = vmatpush.bf16.msrb.mxu3 %v357_v0 }
  0x33   :  { %218 = vmatpush.bf16.msrb.mxu0 %v356_v1  ;;  %239 = vmatpush.bf16.msrb.mxu1 %v356_v1 }
  0x34   :  { %260 = vmatpush.bf16.msrb.mxu2 %v356_v1  ;;  %281 = vmatpush.bf16.msrb.mxu3 %v356_v1 }
  0x37   :  { %219 = vmatpush.bf16.msrb.mxu0 %v355_v2  ;;  %240 = vmatpush.bf16.msrb.mxu1 %v355_v2 }
  0x38   :  { %261 = vmatpush.bf16.msrb.mxu2 %v355_v2  ;;  %282 = vmatpush.bf16.msrb.mxu3 %v355_v2 }
  0x3b   :  { %220 = vmatpush.bf16.msrb.mxu0 %v354_v3  ;;  %241 = vmatpush.bf16.msrb.mxu1 %v354_v3 }
  0x3c   :  { %262 = vmatpush.bf16.msrb.mxu2 %v354_v3  ;;  %283 = vmatpush.bf16.msrb.mxu3 %v354_v3 }
  0x3f   :  { %221 = vmatpush.bf16.msrb.mxu0 %v353_v4  ;;  %242 = vmatpush.bf16.msrb.mxu1 %v353_v4 }
  0x40   :  { %263 = vmatpush.bf16.msrb.mxu2 %v353_v4  ;;  %284 = vmatpush.bf16.msrb.mxu3 %v353_v4 }
  0x43   :  { %222 = vmatpush.bf16.msrb.mxu0 %v352_v5  ;;  %243 = vmatpush.bf16.msrb.mxu1 %v352_v5 }
  0x44   :  { %264 = vmatpush.bf16.msrb.mxu2 %v352_v5  ;;  %285 = vmatpush.bf16.msrb.mxu3 %v352_v5 }
  0x47   :  { %223 = vmatpush.bf16.msrb.mxu0 %v351_v6  ;;  %244 = vmatpush.bf16.msrb.mxu1 %v351_v6 }
  0x48   :  { %265 = vmatpush.bf16.msrb.mxu2 %v351_v6  ;;  %286 = vmatpush.bf16.msrb.mxu3 %v351_v6 }
  0x4b   :  { %224 = vmatpush.bf16.msrb.mxu0 %v350_v7  ;;  %245 = vmatpush.bf16.msrb.mxu1 %v350_v7 }
  0x4c   :  { %266 = vmatpush.bf16.msrb.mxu2 %v350_v7  ;;  %287 = vmatpush.bf16.msrb.mxu3 %v350_v7 }
  0xab   :  { %v143_v12 = vpop.f32.mrf.mxu0 }
  0xac   :  { %v147_v13 = vadd.f32 %v143_v12, %v84_v11 }
  0xae   :  { %366 = vtanh.f32 %v147_v13 }
  0xb3   :  { %v145_v14 = vpop.f32.mrf.mxu0 }
  0xb4   :  { %v367_v15 = vpop.eup %366 }
  0xb5   :  { %149 = vst [vmem:[#allocation9] sm:$0xff] %v367_v15  ;;  %v153_v16 = vpack.c.bf16 %v367_v15, %v367_v15 }
  0xb7   :  { %162 = vmatmul.bf16.vlgmr.msra.gmra.mxu1 %v153_v16 }
 0x134   :  { %v163_v18 = vpop.f32.mrf.mxu1 }
 0x135   :  { %v167_v19 = vadd.f32 %v163_v18, %v152_v17 }
 0x137   :  { %368 = vtanh.f32 %v167_v19 }
 0x13c   :  { %v165_v20 = vpop.f32.mrf.mxu1 }
 0x13d   :  { %v369_v21 = vpop.eup %368 }
 0x13e   :  { %170 = vst [vmem:[#allocation9 + $0x8] sm:$0xff] %v369_v21  ;;  %v174_v22 = vpack.c.bf16 %v369_v21, %v369_v21 }
 0x140   :  { %183 = vmatmul.bf16.vlgmr.msra.gmra.mxu2 %v174_v22 }
 0x1c3   :  { %v184_v25 = vpop.f32.mrf.mxu2 }
 0x1c4   :  { %v188_v26 = vadd.f32 %v184_v25, %v173_v24 }
 0x1c6   :  { %370 = vtanh.f32 %v188_v26 }
 0x1cb   :  { %v186_v27 = vpop.f32.mrf.mxu2 }
 0x1cc   :  { %v371_v28 = vpop.eup %370 }
 0x1cd   :  { %191 = vst [vmem:[#allocation9 + $0x10] sm:$0xff] %v371_v28  ;;  %v195_v29 = vpack.c.bf16 %v371_v28, %v371_v28 }
 0x1cf   :  { %204 = vmatmul.bf16.vlgmr.msra.gmra.mxu3 %v195_v29 }
 0x252   :  { %v205_v31 = vpop.f32.mrf.mxu3 }
 0x253   :  { %v209_v32 = vadd.f32 %v205_v31, %v194_v30 }
 0x255   :  { %372 = vtanh.f32 %v209_v32 }
 0x25a   :  { %v207_v33 = vpop.f32.mrf.mxu3 }
 0x25b   :  { %v373_v34 = vpop.eup %372 }
 0x25c   :  { %212 = vst [vmem:[#allocation9 + $0x18] sm:$0xff] %v373_v34  ;;  %v216_v35 = vpack.c.bf16 %v373_v34, %v373_v34 }
 0x25e   :  { %225 = vmatmul.bf16.vlgmr.msrb.gmra.mxu0 %v216_v35 }
 0x2db   :  { %v226_v38 = vpop.f32.mrf.mxu0 }
 0x2dc   :  { %v230_v39 = vadd.f32 %v226_v38, %v215_v37 }
 0x2de   :  { %374 = vtanh.f32 %v230_v39 }
 0x2e3   :  { %v228_v40 = vpop.f32.mrf.mxu0 }
 0x2e4   :  { %v375_v41 = vpop.eup %374 }
 0x2e5   :  { %233 = vst [vmem:[#allocation9 + $0x20] sm:$0xff] %v375_v41  ;;  %v237_v42 = vpack.c.bf16 %v375_v41, %v375_v41 }
 0x2e7   :  { %246 = vmatmul.bf16.vlgmr.msrb.gmra.mxu1 %v237_v42 }
 0x364   :  { %v247_v44 = vpop.f32.mrf.mxu1 }
 0x365   :  { %v251_v45 = vadd.f32 %v247_v44, %v236_v43 }
 0x367   :  { %376 = vtanh.f32 %v251_v45 }
 0x36c   :  { %v249_v46 = vpop.f32.mrf.mxu1 }
 0x36d   :  { %v377_v47 = vpop.eup %376 }
 0x36e   :  { %254 = vst [vmem:[#allocation9 + $0x28] sm:$0xff] %v377_v47  ;;  %v258_v48 = vpack.c.bf16 %v377_v47, %v377_v47 }
 0x370   :  { %267 = vmatmul.bf16.vlgmr.msrb.gmra.mxu2 %v258_v48 }
 0x3f3   :  { %v268_v51 = vpop.f32.mrf.mxu2 }
 0x3f4   :  { %v272_v52 = vadd.f32 %v268_v51, %v257_v50 }
 0x3f6   :  { %378 = vtanh.f32 %v272_v52 }
 0x3fb   :  { %v270_v53 = vpop.f32.mrf.mxu2 }
 0x3fc   :  { %v379_v54 = vpop.eup %378 }
 0x3fd   :  { %275 = vst [vmem:[#allocation9 + $0x30] sm:$0xff] %v379_v54  ;;  %v279_v55 = vpack.c.bf16 %v379_v54, %v379_v54 }
 0x3ff   :  { %288 = vmatmul.bf16.vlgmr.msrb.gmra.mxu3 %v279_v55 }
 0x482   :  { %v289_v57 = vpop.f32.mrf.mxu3 }
 0x483   :  { %v293_v58 = vadd.f32 %v289_v57, %v278_v56 }
 0x485   :  { %380 = vtanh.f32 %v293_v58 }
 0x48a   :  { %v291_v59 = vpop.f32.mrf.mxu3 }
 0x48b   :  { %v381_v60 = vpop.eup %380 }
 0x48c   :  { %296 = vst [vmem:[#allocation9 + $0x38] sm:$0xff] %v381_v60 }
 0x48d   :  { %310 = dma.vmem_to_hbm [thread:$0]  %s303_s2, 1024, %s305_s30, [#allocation5], %s490_s4, %s490_s4, %s491_s5  }
 0x48e   :  { %482 = dma.done.wait [#allocation5], 1024  }
 0x48f   :  { %483 = vsyncadd [#allocation5], 4294966272 }
 0x490   :  { %315 = vsyncpa [#allocation4], 1 }
 0x491   :  { %316 = vsyncpa [#allocation7], 1 }
 0x492   :  { %317 = vsyncpa [#allocation5], 1 }

</bundles_post_ra>
